<compile_context>
chip_gen: v7x
topology: tpu7x:2x2x1
jax: 0.10.0
libtpu: 0.0.40
codegen_flags: <defaults>
</compile_context>

<pallas_src>
import math
import functools

import jax
import jax.numpy as jnp
from jax import lax
from jax.experimental import pallas as pl
from jax.experimental.pallas import tpu as pltpu


def _attn_kernel(x_ref, wq_ref, wk_ref, wv_ref,
                 bq_ref, bk_ref, bv_ref, mask_ref,
                 *refs, tq, inv_sqrt_head, with_probs, mxu_dtype):
    if with_probs:
        ctx_ref, probs_ref, k_sc, v_sc = refs
    else:
        ctx_ref, k_sc, v_sc = refs
        probs_ref = None

    q_idx = pl.program_id(1)

    # K / V projections computed once per batch element (first query tile) and
    # kept resident in VMEM scratch across all query tiles of that batch.
    @pl.when(q_idx == 0)
    def _():
        x_full = x_ref[0]                                            # (S, H)
        k = jnp.dot(x_full, wk_ref[...],
                    preferred_element_type=jnp.float32) + bk_ref[...]
        v = jnp.dot(x_full, wv_ref[...],
                    preferred_element_type=jnp.float32) + bv_ref[...]
        k_sc[...] = k.astype(k_sc.dtype)
        v_sc[...] = v.astype(v_sc.dtype)

    # Q projection for this query tile only (slice the resident x block).
    start = q_idx * tq
    if tq % 8 == 0:
        start = pl.multiple_of(start, 8)
    xq = x_ref[0, pl.ds(start, tq), :]                               # (TQ, H)
    q = jnp.dot(xq, wq_ref[...],
                preferred_element_type=jnp.float32) + bq_ref[...]
    # Fold the 1/sqrt(head_size) scale into q (cheaper than scaling (TQ, S)).
    q = (q * inv_sqrt_head).astype(mxu_dtype)

    # scores = q @ k^T, transpose absorbed into the MXU contraction.
    scores = lax.dot_general(
        q, k_sc[...],
        dimension_numbers=(((1,), (1,)), ((), ())),
        preferred_element_type=jnp.float32)                          # (TQ, S)
    scores = scores + mask_ref[0]                                    # (1, S) bcast

    # Numerically-stable softmax; reciprocal runs on the EUP slot.
    m = jnp.max(scores, axis=-1, keepdims=True)
    e = jnp.exp(scores - m)
    denom = jnp.sum(e, axis=-1, keepdims=True)
    probs = e * pl.reciprocal(denom, approx=True)                    # (TQ, S)

    # TODO(synk): nn.Dropout(attention_probs_dropout_prob) is identity in eval
    # mode; training-time stochastic dropout not implemented.

    ctx = jnp.dot(probs.astype(mxu_dtype), v_sc[...],
                  preferred_element_type=jnp.float32)                # (TQ, H)

    ctx_ref[0] = ctx.astype(ctx_ref.dtype)
    if with_probs:
        probs_ref[0] = probs.astype(probs_ref.dtype)


def _choose_query_tile(seq_len, max_tq=256):
    """Largest query tile <= max_tq dividing seq_len, sublane (8) aligned.

    256 is a good default for v6e/v7x; pass query_tile=128 explicitly on v5e
    if the f32 probs writeback becomes the binding resource.
    """
    if seq_len <= max_tq:
        return seq_len
    best = None
    for t in range(8, max_tq + 1, 8):
        if seq_len % t == 0:
            best = t
    return best if best is not None else seq_len


def custom_bert_self_attention(hidden_states, attention_mask, params,
                               num_attention_heads, *,
                               output_attentions=True,
                               query_tile=None,
                               mxu_dtype=jnp.bfloat16,
                               probs_dtype=jnp.float32):
    """hidden_states: (B, S, H) f32; attention_mask: (B, 1, S) f32 (additive)."""
    B, S, H = hidden_states.shape
    head_size = H // num_attention_heads
    inv_sqrt_head = 1.0 / math.sqrt(head_size)

    tq = query_tile if query_tile is not None else _choose_query_tile(S)
    assert S % tq == 0, (S, tq)
    n_q = S // tq

    wq, bq = params["wq"], params["bq"]   # (H, H), (1, H)
    wk, bk = params["wk"], params["bk"]
    wv, bv = params["wv"], params["bv"]

    kernel = functools.partial(
        _attn_kernel, tq=tq, inv_sqrt_head=inv_sqrt_head,
        with_probs=output_attentions, mxu_dtype=mxu_dtype)

    out_shape = [jax.ShapeDtypeStruct((B, S, H), jnp.float32)]       # context
    out_specs = [pl.BlockSpec((1, tq, H), lambda b, q: (b, q, 0))]
    if output_attentions:
        out_shape.append(jax.ShapeDtypeStruct((B, S, S), probs_dtype))
        out_specs.append(pl.BlockSpec((1, tq, S), lambda b, q: (b, q, 0)))

    in_specs = [
        pl.BlockSpec((1, S, H), lambda b, q: (b, 0, 0)),   # hidden_states (full seq)
        pl.BlockSpec((H, H), lambda b, q: (0, 0)),         # wq
        pl.BlockSpec((H, H), lambda b, q: (0, 0)),         # wk
        pl.BlockSpec((H, H), lambda b, q: (0, 0)),         # wv
        pl.BlockSpec((1, H), lambda b, q: (0, 0)),         # bq
        pl.BlockSpec((1, H), lambda b, q: (0, 0)),         # bk
        pl.BlockSpec((1, H), lambda b, q: (0, 0)),         # bv
        pl.BlockSpec((1, 1, S), lambda b, q: (b, 0, 0)),   # attention_mask
    ]

    scratch_shapes = [
        pltpu.VMEM((S, H), mxu_dtype),   # K, persists across query tiles
        pltpu.VMEM((S, H), mxu_dtype),   # V
    ]

    # Conservative VMEM budget: only raise the scoped limit when the tiles need
    # it, and never beyond what fits comfortably on v7x (64 MiB physical).
    itemsize = jnp.dtype(probs_dtype).itemsize
    vmem_est = (
        2 * S * H * 4                          # x block (double-buffered)
        + 2 * 3 * H * H * 4 + 2 * 3 * H * 4    # weights + biases
        + 2 * tq * H * 4                       # ctx out block
        + (2 * tq * S * itemsize if output_attentions else 0)
        + 2 * S * H * jnp.dtype(mxu_dtype).itemsize   # K/V scratch
    )
    vmem_limit = None
    if vmem_est > 12 * 1024 * 1024:
        vmem_limit = min(int(vmem_est * 2.5), 56 * 1024 * 1024)

    outs = pl.pallas_call(
        kernel,
        out_shape=tuple(out_shape),
        grid=(B, n_q),
        in_specs=in_specs,
        out_specs=tuple(out_specs),
        scratch_shapes=scratch_shapes,
        compiler_params=pltpu.CompilerParams(
            dimension_semantics=("parallel", "arbitrary"),
            vmem_limit_bytes=vmem_limit),
    )(hidden_states, wq, wk, wv, bq, bk, bv, attention_mask)

    if output_attentions:
        return outs[0], outs[1]
    return outs[0]


def _reference(hidden_states, attention_mask, params, num_attention_heads):
    """Pure-JAX reference mirroring the PyTorch forward (eval mode)."""
    H = hidden_states.shape[-1]
    head_size = H // num_attention_heads
    q = hidden_states @ params["wq"] + params["bq"]
    k = hidden_states @ params["wk"] + params["bk"]
    v = hidden_states @ params["wv"] + params["bv"]
    scores = jnp.einsum("bsh,bth->bst", q, k) / math.sqrt(head_size)
    scores = scores + attention_mask
    probs = jax.nn.softmax(scores, axis=-1)
    ctx = jnp.einsum("bst,bth->bsh", probs, v)
    return ctx, probs


if __name__ == "__main__":
    # Small, config-consistent shapes: hidden_size=32, num_attention_heads=4
    # (head_size=8), batch=2, seq=8.  (Performance tuning must be redone at
    # production S/H; these shapes barely fill a single vreg.)
    B, S, H = 2, 8, 32
    NUM_HEADS = 4

    key = jax.random.PRNGKey(0)
    k_x, k_wq, k_wk, k_wv, k_bq, k_bk, k_bv = jax.random.split(key, 7)

    hidden_states = jax.random.normal(k_x, (B, S, H), dtype=jnp.float32)

    params = {
        "wq": 0.02 * jax.random.normal(k_wq, (H, H), dtype=jnp.float32),
        "wk": 0.02 * jax.random.normal(k_wk, (H, H), dtype=jnp.float32),
        "wv": 0.02 * jax.random.normal(k_wv, (H, H), dtype=jnp.float32),
        "bq": 0.02 * jax.random.normal(k_bq, (1, H), dtype=jnp.float32),
        "bk": 0.02 * jax.random.normal(k_bk, (1, H), dtype=jnp.float32),
        "bv": 0.02 * jax.random.normal(k_bv, (1, H), dtype=jnp.float32),
    }

    # Additive attention mask (0 = keep, -10000 = masked), BERT convention.
    mask = jnp.zeros((B, 1, S), dtype=jnp.float32)
    mask = mask.at[:, :, -2:].set(-10000.0)

    ctx_ref, probs_ref = _reference(hidden_states, mask, params, NUM_HEADS)

    # output_attentions=True path: context + attention_probs.
    ctx, probs = custom_bert_self_attention(
        hidden_states, mask, params, NUM_HEADS, output_attentions=True)
    ctx = jax.block_until_ready(ctx)
    probs = jax.block_until_ready(probs)

    # bf16 MXU operands + approx reciprocal -> loosened tolerance vs f32 ref.
    assert jnp.allclose(ctx, ctx_ref, atol=2e-2, rtol=2e-2), "ctx mismatch"
    assert jnp.allclose(probs, probs_ref, atol=2e-2, rtol=2e-2), "probs mismatch"

    # output_attentions=False path: context only (no O(S^2) probs writeback).
    ctx_only = custom_bert_self_attention(
        hidden_states, mask, params, NUM_HEADS, output_attentions=False)
    ctx_only = jax.block_until_ready(ctx_only)
    assert jnp.allclose(ctx_only, ctx_ref, atol=2e-2, rtol=2e-2), "ctx-only mismatch"

    print("KERNEL_OK")
</pallas_src>

<mosaic_0001>
module attributes {stable_mosaic.version = 11 : i64} {
  func.func @_attn_kernel(%arg0: i32, %arg1: i32, %arg2: memref<1x8x32xf32, #tpu.memory_space<vmem>>, %arg3: memref<32x32xf32, #tpu.memory_space<vmem>>, %arg4: memref<32x32xf32, #tpu.memory_space<vmem>>, %arg5: memref<32x32xf32, #tpu.memory_space<vmem>>, %arg6: memref<1x32xf32, #tpu.memory_space<vmem>>, %arg7: memref<1x32xf32, #tpu.memory_space<vmem>>, %arg8: memref<1x32xf32, #tpu.memory_space<vmem>>, %arg9: memref<1x1x8xf32, #tpu.memory_space<vmem>>, %arg10: memref<1x8x32xf32, #tpu.memory_space<vmem>>, %arg11: memref<1x8x8xf32, #tpu.memory_space<vmem>>, %arg12: memref<8x32xbf16, #tpu.memory_space<vmem>>, %arg13: memref<8x32xbf16, #tpu.memory_space<vmem>>) attributes {dimension_semantics = [#tpu.dimension_semantics<parallel>, #tpu.dimension_semantics<arbitrary>], iteration_bounds = array<i64: 2, 1>, scalar_prefetch = 0 : i64, scratch_operands = 2 : i64, tpu.core_type = #tpu.core_type<tc>, window_params = [{transform_indices = @transform_0, window_bounds = array<i64: 1, 8, 32>}, {pipeline_mode = #tpu.pipeline_mode<synchronous>, transform_indices = @transform_1, window_bounds = array<i64: 32, 32>}, {pipeline_mode = #tpu.pipeline_mode<synchronous>, transform_indices = @transform_2, window_bounds = array<i64: 32, 32>}, {pipeline_mode = #tpu.pipeline_mode<synchronous>, transform_indices = @transform_3, window_bounds = array<i64: 32, 32>}, {pipeline_mode = #tpu.pipeline_mode<synchronous>, transform_indices = @transform_4, window_bounds = array<i64: 1, 32>}, {pipeline_mode = #tpu.pipeline_mode<synchronous>, transform_indices = @transform_5, window_bounds = array<i64: 1, 32>}, {pipeline_mode = #tpu.pipeline_mode<synchronous>, transform_indices = @transform_6, window_bounds = array<i64: 1, 32>}, {transform_indices = @transform_7, window_bounds = array<i64: 1, 1, 8>}, {transform_indices = @transform_8, window_bounds = array<i64: 1, 8, 32>}, {transform_indices = @transform_9, window_bounds = array<i64: 1, 8, 8>}]} {
    %c0_i32 = arith.constant 0 : i32
    %0 = arith.cmpi eq, %arg1, %c0_i32 : i32
    %1 = arith.extui %0 : i1 to i32
    %c0_i32_0 = arith.constant 0 : i32
    %2 = arith.cmpi ne, %1, %c0_i32_0 : i32
    scf.if %2 {
      %c0_24 = arith.constant 0 : index
      %c0_25 = arith.constant 0 : index
      %c0_26 = arith.constant 0 : index
      %41 = vector.load %arg2[%c0_24, %c0_25, %c0_26] : memref<1x8x32xf32, #tpu.memory_space<vmem>>, vector<1x8x32xf32>
      %42 = vector.shape_cast %41 : vector<1x8x32xf32> to vector<8x32xf32>
      %c0_27 = arith.constant 0 : index
      %c0_28 = arith.constant 0 : index
      %43 = vector.load %arg4[%c0_27, %c0_28] : memref<32x32xf32, #tpu.memory_space<vmem>>, vector<32x32xf32>
      %cst_29 = arith.constant dense<0.000000e+00> : vector<8x32xf32>
      %44 = tpu.matmul %42, %43, %cst_29 {dimension_numbers = #tpu.dot_dimension_numbers<[1], [0], [0], [1], [0, 0, 1, 1], [], []>} : vector<8x32xf32>, vector<32x32xf32>, vector<8x32xf32> -> vector<8x32xf32>
      %c0_30 = arith.constant 0 : index
      %c0_31 = arith.constant 0 : index
      %45 = vector.load %arg7[%c0_30, %c0_31] : memref<1x32xf32, #tpu.memory_space<vmem>>, vector<1x32xf32>
      %46 = vector.broadcast %45 : vector<1x32xf32> to vector<8x32xf32>
      %47 = arith.addf %44, %46 : vector<8x32xf32>
      %c0_32 = arith.constant 0 : index
      %c0_33 = arith.constant 0 : index
      %48 = vector.load %arg5[%c0_32, %c0_33] : memref<32x32xf32, #tpu.memory_space<vmem>>, vector<32x32xf32>
      %cst_34 = arith.constant dense<0.000000e+00> : vector<8x32xf32>
      %49 = tpu.matmul %42, %48, %cst_34 {dimension_numbers = #tpu.dot_dimension_numbers<[1], [0], [0], [1], [0, 0, 1, 1], [], []>} : vector<8x32xf32>, vector<32x32xf32>, vector<8x32xf32> -> vector<8x32xf32>
      %c0_35 = arith.constant 0 : index
      %c0_36 = arith.constant 0 : index
      %50 = vector.load %arg8[%c0_35, %c0_36] : memref<1x32xf32, #tpu.memory_space<vmem>>, vector<1x32xf32>
      %51 = vector.broadcast %50 : vector<1x32xf32> to vector<8x32xf32>
      %52 = arith.addf %49, %51 : vector<8x32xf32>
      %53 = arith.truncf %47 : vector<8x32xf32> to vector<8x32xbf16>
      %c0_37 = arith.constant 0 : index
      %c0_38 = arith.constant 0 : index
      %54 = vector.load %arg12[%c0_37, %c0_38] : memref<8x32xbf16, #tpu.memory_space<vmem>>, vector<8x32xbf16>
      tpu.vector_store %arg12[%c0_37, %c0_38], %53 {strides = array<i32>} : memref<8x32xbf16, #tpu.memory_space<vmem>>, vector<8x32xbf16>,
      %55 = arith.truncf %52 : vector<8x32xf32> to vector<8x32xbf16>
      %c0_39 = arith.constant 0 : index
      %c0_40 = arith.constant 0 : index
      %56 = vector.load %arg13[%c0_39, %c0_40] : memref<8x32xbf16, #tpu.memory_space<vmem>>, vector<8x32xbf16>
      tpu.vector_store %arg13[%c0_39, %c0_40], %55 {strides = array<i32>} : memref<8x32xbf16, #tpu.memory_space<vmem>>, vector<8x32xbf16>,
    } else {
    }
    %c8_i32 = arith.constant 8 : i32
    %3 = arith.muli %arg1, %c8_i32 : i32
    %4 = tpu.assume_multiple %3, 8 : i32
    %c0 = arith.constant 0 : index
    %5 = arith.index_cast %4 : i32 to index
    %c0_1 = arith.constant 0 : index
    %6 = vector.load %arg2[%c0, %5, %c0_1] : memref<1x8x32xf32, #tpu.memory_space<vmem>>, vector<1x8x32xf32>
    %7 = vector.shape_cast %6 : vector<1x8x32xf32> to vector<8x32xf32>
    %c0_2 = arith.constant 0 : index
    %c0_3 = arith.constant 0 : index
    %8 = vector.load %arg3[%c0_2, %c0_3] : memref<32x32xf32, #tpu.memory_space<vmem>>, vector<32x32xf32>
    %cst = arith.constant dense<0.000000e+00> : vector<8x32xf32>
    %9 = tpu.matmul %7, %8, %cst {dimension_numbers = #tpu.dot_dimension_numbers<[1], [0], [0], [1], [0, 0, 1, 1], [], []>} : vector<8x32xf32>, vector<32x32xf32>, vector<8x32xf32> -> vector<8x32xf32>
    %c0_4 = arith.constant 0 : index
    %c0_5 = arith.constant 0 : index
    %10 = vector.load %arg6[%c0_4, %c0_5] : memref<1x32xf32, #tpu.memory_space<vmem>>, vector<1x32xf32>
    %11 = vector.broadcast %10 : vector<1x32xf32> to vector<8x32xf32>
    %12 = arith.addf %9, %11 : vector<8x32xf32>
    %cst_6 = arith.constant 0.353553385 : f32
    %13 = vector.broadcast %cst_6 : f32 to vector<8x32xf32>
    %14 = arith.mulf %12, %13 : vector<8x32xf32>
    %15 = arith.truncf %14 : vector<8x32xf32> to vector<8x32xbf16>
    %c0_7 = arith.constant 0 : index
    %c0_8 = arith.constant 0 : index
    %16 = vector.load %arg12[%c0_7, %c0_8] : memref<8x32xbf16, #tpu.memory_space<vmem>>, vector<8x32xbf16>
    %cst_9 = arith.constant dense<0.000000e+00> : vector<8x8xf32>
    %17 = tpu.matmul %15, %16, %cst_9 {dimension_numbers = #tpu.dot_dimension_numbers<[1], [1], [0], [0], [0, 0, 1, 0], [], []>} : vector<8x32xbf16>, vector<8x32xbf16>, vector<8x8xf32> -> vector<8x8xf32>
    %c0_10 = arith.constant 0 : index
    %c0_11 = arith.constant 0 : index
    %c0_12 = arith.constant 0 : index
    %18 = vector.load %arg9[%c0_10, %c0_11, %c0_12] : memref<1x1x8xf32, #tpu.memory_space<vmem>>, vector<1x1x8xf32>
    %19 = vector.shape_cast %18 : vector<1x1x8xf32> to vector<1x8xf32>
    %20 = vector.broadcast %19 : vector<1x8xf32> to vector<8x8xf32>
    %21 = arith.addf %17, %20 : vector<8x8xf32>
    %cst_13 = arith.constant dense<0xFF800000> : vector<8xf32>
    %22 = vector.multi_reduction <maximumf>, %21, %cst_13 [1] : vector<8x8xf32> to vector<8xf32>
    %23 = vector.shape_cast %22 : vector<8xf32> to vector<8x1xf32>
    %24 = vector.broadcast %23 : vector<8x1xf32> to vector<8x8xf32>
    %25 = arith.subf %21, %24 : vector<8x8xf32>
    %26 = math.exp %25 : vector<8x8xf32>
    %cst_14 = arith.constant dense<0.000000e+00> : vector<8xf32>
    %27 = vector.multi_reduction <add>, %26, %cst_14 [1] : vector<8x8xf32> to vector<8xf32>
    %28 = vector.shape_cast %27 : vector<8xf32> to vector<8x1xf32>
    %29 = tpu.reciprocal %28 {approx = true} : vector<8x1xf32> -> vector<8x1xf32>
    %30 = vector.broadcast %29 : vector<8x1xf32> to vector<8x8xf32>
    %31 = arith.mulf %26, %30 : vector<8x8xf32>
    %32 = arith.truncf %31 : vector<8x8xf32> to vector<8x8xbf16>
    %c0_15 = arith.constant 0 : index
    %c0_16 = arith.constant 0 : index
    %33 = vector.load %arg13[%c0_15, %c0_16] : memref<8x32xbf16, #tpu.memory_space<vmem>>, vector<8x32xbf16>
    %cst_17 = arith.constant dense<0.000000e+00> : vector<8x32xf32>
    %34 = tpu.matmul %32, %33, %cst_17 {dimension_numbers = #tpu.dot_dimension_numbers<[1], [0], [0], [1], [0, 0, 1, 1], [], []>} : vector<8x8xbf16>, vector<8x32xbf16>, vector<8x32xf32> -> vector<8x32xf32>
    %c0_18 = arith.constant 0 : index
    %c0_19 = arith.constant 0 : index
    %c0_20 = arith.constant 0 : index
    %35 = vector.load %arg10[%c0_18, %c0_19, %c0_20] : memref<1x8x32xf32, #tpu.memory_space<vmem>>, vector<1x8x32xf32>
    %36 = vector.shape_cast %35 : vector<1x8x32xf32> to vector<8x32xf32>
    %37 = vector.shape_cast %34 : vector<8x32xf32> to vector<1x8x32xf32>
    tpu.vector_store %arg10[%c0_18, %c0_19, %c0_20], %37 {strides = array<i32>} : memref<1x8x32xf32, #tpu.memory_space<vmem>>, vector<1x8x32xf32>,
    %c0_21 = arith.constant 0 : index
    %c0_22 = arith.constant 0 : index
    %c0_23 = arith.constant 0 : index
    %38 = vector.load %arg11[%c0_21, %c0_22, %c0_23] : memref<1x8x8xf32, #tpu.memory_space<vmem>>, vector<1x8x8xf32>
    %39 = vector.shape_cast %38 : vector<1x8x8xf32> to vector<8x8xf32>
    %40 = vector.shape_cast %31 : vector<8x8xf32> to vector<1x8x8xf32>
    tpu.vector_store %arg11[%c0_21, %c0_22, %c0_23], %40 {strides = array<i32>} : memref<1x8x8xf32, #tpu.memory_space<vmem>>, vector<1x8x8xf32>,
    return
  }
  func.func @transform_0(%arg0: i32, %arg1: i32) -> (i32, i32, i32) {
    %c0_i32 = arith.constant 0 : i32
    %c0_i32_0 = arith.constant 0 : i32
    %c0_i32_1 = arith.constant 0 : i32
    return %arg0, %c0_i32, %c0_i32_0 : i32, i32, i32
  }
  func.func @transform_1(%arg0: i32, %arg1: i32) -> (i32, i32) {
    %c0_i32 = arith.constant 0 : i32
    %c0_i32_0 = arith.constant 0 : i32
    %c0_i32_1 = arith.constant 0 : i32
    return %c0_i32, %c0_i32_0 : i32, i32
  }
  func.func @transform_2(%arg0: i32, %arg1: i32) -> (i32, i32) {
    %c0_i32 = arith.constant 0 : i32
    %c0_i32_0 = arith.constant 0 : i32
    %c0_i32_1 = arith.constant 0 : i32
    return %c0_i32, %c0_i32_0 : i32, i32
  }
  func.func @transform_3(%arg0: i32, %arg1: i32) -> (i32, i32) {
    %c0_i32 = arith.constant 0 : i32
    %c0_i32_0 = arith.constant 0 : i32
    %c0_i32_1 = arith.constant 0 : i32
    return %c0_i32, %c0_i32_0 : i32, i32
  }
  func.func @transform_4(%arg0: i32, %arg1: i32) -> (i32, i32) {
    %c0_i32 = arith.constant 0 : i32
    %c0_i32_0 = arith.constant 0 : i32
    %c0_i32_1 = arith.constant 0 : i32
    return %c0_i32, %c0_i32_0 : i32, i32
  }
  func.func @transform_5(%arg0: i32, %arg1: i32) -> (i32, i32) {
    %c0_i32 = arith.constant 0 : i32
    %c0_i32_0 = arith.constant 0 : i32
    %c0_i32_1 = arith.constant 0 : i32
    return %c0_i32, %c0_i32_0 : i32, i32
  }
  func.func @transform_6(%arg0: i32, %arg1: i32) -> (i32, i32) {
    %c0_i32 = arith.constant 0 : i32
    %c0_i32_0 = arith.constant 0 : i32
    %c0_i32_1 = arith.constant 0 : i32
    return %c0_i32, %c0_i32_0 : i32, i32
  }
  func.func @transform_7(%arg0: i32, %arg1: i32) -> (i32, i32, i32) {
    %c0_i32 = arith.constant 0 : i32
    %c0_i32_0 = arith.constant 0 : i32
    %c0_i32_1 = arith.constant 0 : i32
    return %arg0, %c0_i32, %c0_i32_0 : i32, i32, i32
  }
  func.func @transform_8(%arg0: i32, %arg1: i32) -> (i32, i32, i32) {
    %c0_i32 = arith.constant 0 : i32
    %c0_i32_0 = arith.constant 0 : i32
    return %arg0, %arg1, %c0_i32 : i32, i32, i32
  }
  func.func @transform_9(%arg0: i32, %arg1: i32) -> (i32, i32, i32) {
    %c0_i32 = arith.constant 0 : i32
    %c0_i32_0 = arith.constant 0 : i32
    return %arg0, %arg1, %c0_i32 : i32, i32, i32
  }
}

</mosaic_0001>

<bundles_post_ra>
// kernel: tpu_custom_call.1
= control target key start
LH: loop header
LB: loop body
LE: loop exit
PB: predicated region body
PF: predicated region fallthrough
CT: control target
= control target key end

     0   :  { %s1869_s0 = inlined_call_operand.hbm [shape: f32[2,8,32], index: 0, kind: input, shape index: {}]   ;;  %s1870_s1 = inlined_call_operand.hbm [shape: f32[32,32], index: 1, kind: input, shape index: {}]   ;;  %s1871_s2 = inlined_call_operand.hbm [shape: f32[32,32], index: 2, kind: input, shape index: {}]   ;;  %s1872_s3 = inlined_call_operand.hbm [shape: f32[32,32], index: 3, kind: input, shape index: {}]   ;;  %s1873_s4 = inlined_call_operand.vmem [shape: f32[1,32], index: 4, kind: input, shape index: {}]   ;;  %s1874_s5 = inlined_call_operand.vmem [shape: f32[1,32], index: 5, kind: input, shape index: {}]   ;;  %s1875_s6 = inlined_call_operand.vmem [shape: f32[1,32], index: 6, kind: input, shape index: {}]   ;;  %s1876_s7 = inlined_call_operand.vmem [shape: f32[2,1,8], index: 7, kind: input, shape index: {}]   ;;  %s1877_s8 = inlined_call_operand.hbm [shape: f32[2,8,32], index: 8, kind: output, shape index: {0}]   ;;  %s1878_s9 = inlined_call_operand.hbm [shape: f32[2,8,8], index: 9, kind: output, shape index: {1}]  }
   0x1   :  { %1887 = sst [smem:[#allocation22_spill]] %s1875_s6 }
   0x2   :  { %1888 = sst [smem:[#allocation23_spill]] %s1876_s7 }
   0x3   :  { %1889 = sst [smem:[#allocation24_spill]] %s1877_s8 }
   0x4   :  { %1890 = sst [smem:[#allocation25_spill]] %s1878_s9 }
   0x5   :  { %15 = vsyncpa [#allocation5], 0 }
   0x6   :  { %17 = vsyncpa [#allocation5 + $0x1], 0 }
   0x7   :  { %18 = vsyncpa [#allocation8], 0 }
   0x8   :  { %19 = vsyncpa [#allocation11], 0 }
   0x9   :  { %20 = vsyncpa [#allocation6], 0 }
   0xa   :  { %22 = vsyncpa [#allocation6 + $0x1], 0 }
   0xb   :  { %23 = vsyncpa [#allocation14], 0 }
   0xc   :  { %25 = vsyncpa [#allocation14 + $0x1], 0  ;;  %s1522_s30 = smov 0   ;;  %s1524_s10 = smov 0  }
   0xd   :  { %s1526_s11 = smov 0   ;;  %s1528_s12 = smov 0  }
   0xe   :  { %s1530_s13 = smov 0   ;;  %s1532_s14 = smov 0  }
   0xf LB: > { %1891 = sst [smem:[#allocation20_spill]] %s1439_s30  ;;  %s1003_s15 = sadd.s32 4294967295, %s1459_s14   ;;  %s1459_s14 = sphi %s1532_s14, %s31_s14   ;;  %s1455_s13 = sphi %s1530_s13, %s1918_s13   ;;  %s1451_s12 = sphi %s1528_s12, %s1917_s12   ;;  %s1447_s11 = sphi %s1526_s11, %s1916_s11   ;;  %s1443_s10 = sphi %s1524_s10, %s1915_s10   ;;  %s1439_s30 = sphi %s1522_s30, %s1914_s30  }
  0x10   : > { %s1004_s16 = sadd.s32 4294967294, %s1459_s14   ;;  %p63_p0 = scmp.ne.s32.totalorder %s1443_s10, %s1439_s30 }
  0x11   : > { %p1556_p1 = scmp.eq.s32.totalorder %s1003_s15, 0  ;;  %p1560_p2 = scmp.eq.s32.totalorder %s1003_s15, 1 }
  0x12   : > { %p247_p3 = scmp.eq.s32.totalorder %s1004_s16, 1  ;;  %p1005_p5 = scmp.ge.s32.totalorder %s1459_s14, 1 }
  0x13   : > { %s1892_s17 = scalar_select %p1556_p1, 1, 0 }
  0x14   : > { %s1893_s18 = scalar_select %p1560_p2, 1, 0 }
  0x15   : > { %p1566_p4 = por %p1556_p1, %p63_p0  ;;  %p1571_p6 = por %p247_p3, %p63_p0 }
  0x16   : > { %p282_p7 = scmp.lt.s32.totalorder %s1459_s14, 3  ;;  %s1461_s22 = smov [#allocation7]  }
  0x17   : > { %s1894_s19 = scalar_select %p1566_p4, 1, 0 }
  0x18   : > { %s1895_s20 = scalar_select %p1571_p6, 1, 0 }
  0x19   : > { %p1576_p8 = pnand %p1005_p5, %p282_p7  ;;  %s294_s23 = sshll.u32 %s1461_s22, 4  ;;  %s1580_s23 = int_to_ptr.vmem [resolvable:$true] %s294_s23 }
  0x1a   : > { %1896 = sst [smem:[#allocation21_spill]] %s1895_s20  ;;  %s1462_s25 = smov [#allocation9]  }
  0x1b   : > { %s1897_s21 = scalar_select %p1576_p8, 1, 0 }
  0x1c   : > { %p1134_p9 = pneg %p1576_p8  ;;  %s307_s26 = sshll.u32 %s1462_s25, 4  ;;  %s1591_s26 = int_to_ptr.vmem [resolvable:$true] %s307_s26 }
  0x1d   : > { %s1463_s27 = smov [#allocation10]   ;;  %s1223_s16 = scalar_lea.hbm %s1870_s1, 512 }
  0x1e   : > { %p1587_p11 = pnand %p1134_p9, %p1556_p1  ;;  %s1593_s28 = sshll.u32 %s1463_s27, 4  ;;  %s321_s28 = int_to_ptr.vmem [resolvable:$true] %s1593_s28 }
  0x1f   : > { %p1224_p12 = scmp.ne.s32.totalorder %s1870_s1, %s1223_s16  ;;  %p1230_p5 = scmp.lt.u32.totalorder %s1223_s16, %s1870_s1 }
  0x20   : > { %p1603_p13 = pneg %p1587_p11 }
  0x22   : > { %p1226_p0 = pnand %p1603_p13, %p1224_p12 }
  0x24   : > { %p1227_p3 = pneg %p1226_p0 }
  0x26   : > { %p1232_p7 = pnand %p1230_p5, %p1227_p3 }
  0x28   : > { %1235 = shalt.err (!%p1232_p7)
}
  0x29   : > { %s1236_s20 = scalar_lea.vmem %s1580_s23, 512  ;;  %p1244_p1 = scmp.lt.s32.totalorder %s1580_s23, %s1580_s23 }
  0x2a   : > { %p1237_p9 = scmp.ne.s32.totalorder %s1580_s23, %s1236_s20  ;;  %p1245_p4 = scmp.lt.s32.totalorder %s1236_s20, %s1236_s20 }
  0x2c   : > { %p1239_p10 = pnand %p1237_p9, %p1603_p13  ;;  %p1246_p12 = por %p1245_p4, %p1244_p1 }
  0x2e   : > { %p1240_p6 = pneg %p1239_p10 }
  0x30   : > { %p1247_p0 = pnand %p1246_p12, %p1240_p6 }
  0x32   : > { %1250 = shalt.err (!%p1247_p0)
}
  0x33   : > { %s1464_s29 = smov 128   ;;  %s1465_s15 = smov 8  }
  0x34   : > { %1137 = dma.hbm_to_vmem [thread:$0]  (!%p1587_p11), %s1870_s1, 512, %s1580_s23, [#allocation8], %s1464_s29, %s1464_s29, %s1465_s15  }
  0x35   : > { %s1251_s20 = scalar_lea.hbm %s1871_s2, 512 }
  0x36   : > { %p1252_p1 = scmp.ne.s32.totalorder %s1871_s2, %s1251_s20  ;;  %p1258_p10 = scmp.lt.u32.totalorder %s1251_s20, %s1871_s2 }
  0x38   : > { %p1254_p4 = pnand %p1252_p1, %p1603_p13 }
  0x3a   : > { %p1255_p6 = pneg %p1254_p4 }
  0x3c   : > { %p1260_p3 = pnand %p1258_p10, %p1255_p6 }
  0x3e   : > { %1263 = shalt.err (!%p1260_p3)
}
  0x3f   : > { %s1264_s23 = scalar_lea.vmem %s1591_s26, 512  ;;  %p1272_p12 = scmp.lt.s32.totalorder %s1591_s26, %s1591_s26 }
  0x40   : > { %p1265_p5 = scmp.ne.s32.totalorder %s1591_s26, %s1264_s23  ;;  %p1273_p0 = scmp.lt.s32.totalorder %s1264_s23, %s1264_s23 }
  0x42   : > { %p1267_p7 = pnand %p1265_p5, %p1603_p13  ;;  %p1274_p1 = por %p1273_p0, %p1272_p12 }
  0x44   : > { %p1268_p9 = pneg %p1267_p7 }
  0x46   : > { %p1275_p4 = pnand %p1274_p1, %p1268_p9 }
  0x48   : > { %1278 = shalt.err (!%p1275_p4)
}
  0x49   : > { %1140 = dma.hbm_to_vmem [thread:$0]  (!%p1587_p11), %s1871_s2, 512, %s1591_s26, [#allocation8], %s1464_s29, %s1464_s29, %s1465_s15  }
  0x4a   : > { %s1279_s16 = scalar_lea.hbm %s1872_s3, 512 }
  0x4b   : > { %p1280_p6 = scmp.ne.s32.totalorder %s1872_s3, %s1279_s16  ;;  %p1286_p5 = scmp.lt.u32.totalorder %s1279_s16, %s1872_s3 }
  0x4d   : > { %p1282_p10 = pnand %p1280_p6, %p1603_p13 }
  0x4f   : > { %p1283_p3 = pneg %p1282_p10 }
  0x51   : > { %p1288_p7 = pnand %p1286_p5, %p1283_p3 }
  0x53   : > { %1291 = shalt.err (!%p1288_p7)
}
  0x54   : > { %s1292_s23 = scalar_lea.vmem %s321_s28, 512  ;;  %p1300_p1 = scmp.lt.s32.totalorder %s321_s28, %s321_s28 }
  0x55   : > { %p1293_p9 = scmp.ne.s32.totalorder %s321_s28, %s1292_s23  ;;  %p1301_p4 = scmp.lt.s32.totalorder %s1292_s23, %s1292_s23 }
  0x57   : > { %p1295_p12 = pnand %p1293_p9, %p1603_p13  ;;  %p1302_p8 = por %p1301_p4, %p1300_p1 }
  0x59   : > { %p1296_p0 = pneg %p1295_p12 }
  0x5b   : > { %p1303_p2 = pnand %p1302_p8, %p1296_p0 }
  0x5d   : > { %1306 = shalt.err (!%p1303_p2)
}
  0x5e   : > { %1143 = dma.hbm_to_vmem [thread:$0]  (!%p1587_p11), %s1872_s3, 512, %s321_s28, [#allocation11], %s1464_s29, %s1464_s29, %s1465_s15  }
  0x5f   : > { %s50_s30 = sadd.s32 1, %s1447_s11  ;;  %s43_s24 = sadd.s32 1, %s1455_s13 }
  0x60   : > { %p57_p2 = scmp.ne.s32.totalorder %s1447_s11, %s1443_s10  ;;  %p45_p8 = scmp.ge.s32.totalorder %s43_s24, 2 }
  0x61   : > { %p58_p13 = scmp.eq.s32.totalorder %s1459_s14, 0  ;;  %p1900_p6 = scmp.ne.s32.totalorder %s1893_s18, 0 }
  0x62   : > { %p1158_p3 = scmp.lt.s32.totalorder %s1459_s14, 2  ;;  %s1920_s24 = smov (%p45_p8, %s43_s24), 0 }
  0x63   : > { %p1682_p10 = por %p1900_p6, %p57_p2  ;;  %p59_p5 = por %p58_p13, %p57_p2 }
  0x64   : > { %s343_s8 = sand.u32 1, %s1447_s11   ;;  %s47_s9 = ssub.s32 %s1455_s13, %s1920_s24 }
  0x65   : > { %p48_p7 = scmp.eq.s32.totalorder %s47_s9, 0  ;;  %s1010_s28 = sshll.u32 %s343_s8, 3 }
  0x66   : > { %s1011_s29 = sshll.u32 %s1455_s13, 7  ;;  %s347_s25 = scalar_lea.vmem [#allocation4], %s1010_s28 }
  0x67   : > { %s1694_s15 = scalar_select %p48_p7, %s1447_s11, %s50_s30  }
  0x68   : > { %s1699_s18 = scalar_lea.hbm %s1869_s0, %s1011_s29  ;;  %s354_s27 = sshll.u32 %s347_s25, 4  ;;  %s1701_s27 = int_to_ptr.vmem [resolvable:$true] %s354_s27 }
  0x69   : > { %p1705_p11 = pnand %p1158_p3, %p59_p5  ;;  %s344_s23 = scalar_lea.sflag [#allocation5], %s343_s8 }
  0x6a   : > { %s1307_s26 = scalar_lea.hbm %s1699_s18, 128  ;;  %s1312_s9 = scalar_lea.hbm %s1869_s0, 256 }
  0x6b   : > { %p1308_p9 = scmp.ne.s32.totalorder %s1699_s18, %s1307_s26  ;;  %p1309_p12 = pneg %p1705_p11 }
  0x6c   : > { %p1313_p4 = scmp.lt.u32.totalorder %s1699_s18, %s1869_s0  ;;  %p1314_p2 = scmp.lt.u32.totalorder %s1312_s9, %s1307_s26 }
  0x6d   : > { %p1310_p0 = pnand %p1309_p12, %p1308_p9  ;;  %p1316_p13 = scmp.lt.u32.totalorder %s1307_s26, %s1699_s18 }
  0x6e   : > { %p1315_p8 = por %p1314_p2, %p1313_p4 }
  0x6f   : > { %p1311_p1 = pneg %p1310_p0 }
  0x70   : > { %p1317_p6 = por %p1316_p13, %p1315_p8 }
  0x72   : > { %p1318_p3 = pnand %p1317_p6, %p1311_p1 }
  0x74   : > { %1321 = shalt.err (!%p1318_p3)
}
  0x75   : > { %s1322_s8 = scalar_lea.vmem %s1701_s27, 128  ;;  %s1466_s16 = smov [#allocation4]  }
  0x76   : > { %p1323_p5 = scmp.ne.s32.totalorder %s1701_s27, %s1322_s8  ;;  %s1327_s22 = sshll.u32 %s1466_s16, 4  ;;  %s1328_s22 = int_to_ptr.vmem [resolvable:$false] %s1327_s22 }
  0x77   : > { %s1329_s25 = scalar_lea.vmem %s1328_s22, 256  ;;  %p1330_p0 = scmp.lt.s32.totalorder %s1701_s27, %s1328_s22 }
  0x78   : > { %p1325_p7 = pnand %p1323_p5, %p1309_p12  ;;  %p1331_p4 = scmp.lt.s32.totalorder %s1329_s25, %s1322_s8 }
  0x7a   : > { %p1326_p9 = pneg %p1325_p7  ;;  %p1332_p2 = por %p1331_p4, %p1330_p0 }
  0x7c   : > { %p1333_p8 = pnand %p1332_p2, %p1326_p9 }
  0x7e   : > { %1336 = shalt.err (!%p1333_p8)
}
  0x7f   : > { %1147 = dma.hbm_to_vmem [thread:$0]  (!%p1705_p11), %s1699_s18, 128, %s1701_s27, %s344_s23  }
  0x80   : > { %p1903_p1 = scmp.ne.s32.totalorder %s1897_s21, 0 }
  0x81   : > { %s1737_s26 = sand.u32 (!%p1903_p1), 1, %s1443_s10   ;;  %p1904_p12 = scmp.ne.s32.totalorder (!%p1903_p1), %s1894_s19, 0 }
  0x82   : > { %369 = sbr.rel (%p1903_p1) target bundleno = 1143 (0x477), region = 52  ;;  %s1740_s6 = sshll.u32 (!%p1903_p1), %s1737_s26, 3 }
  0x83   : > { %s372_s30 = scalar_lea.sflag (!%p1903_p1), [#allocation5], %s1737_s26  ;;  %s375_s9 = scalar_lea.vmem (!%p1903_p1), [#allocation4], %s1740_s6 }
  0x89   : > { %1418 = dma.done.wait (%p1904_p12), %s372_s30, 128  }
  0x8a   : > { %1420 = vsyncadd (%p1904_p12), %s372_s30, 4294967168  ;;  %p1905_p11 = scmp.ne.s32.totalorder %s1892_s17, 0 }
  0x8c   : > { %1422 = dma.done.wait (%p1905_p11), [#allocation8], 1024  }
  0x8d   : > { %1424 = vsyncadd (%p1905_p11), [#allocation8], 4294966272 }
  0x8e   : > { %1426 = dma.done.wait (%p1905_p11), [#allocation11], 512  }
  0x8f   : > { %1428 = vsyncadd (%p1905_p11), [#allocation11], 4294966784  ;;  %v1467_v0 = vmov 0.0|0.0   ;;  %vm1468_vm0 = vmmov 0   ;;  %v1469_v1 = vmov 0.0   ;;  %v439_v2 = vld [vmem:[#allocation9] sm:$0xff] }
  0x90   : > { %1098 = vmatprep.subr.bf16.mxu0 %v1467_v0  ;;  %1061 = vmatprep.mubr.msk.f32.mxu0 %vm1468_vm0, %v1469_v1  ;;  %v440_v3 = vld [vmem:[#allocation9 + $0x8] sm:$0xff]  ;;  %v441_v4 = vld [vmem:[#allocation9 + $0x10] sm:$0xff]  ;;  %v442_v6 = vld [vmem:[#allocation9 + $0x18] sm:$0xff]  ;;  %vm450_vm1 = vcmask 261120   ;;  %vm606_vm2 = vcmask 257024   ;;  %s1906_s23 = sld [smem:[#allocation22_spill]] }
  0x91   : > { %1104 = vmatprep.subr.bf16.mxu1 %v1467_v0  ;;  %1072 = vmatprep.mubr.msk.f32.mxu1 %vm1468_vm0, %v1469_v1  ;;  %v1099_v5 = vpack.c.bf16 %v440_v3, %v439_v2  ;;  %v1102_v7 = vpack.c.bf16 %v442_v6, %v441_v4  ;;  %v613_v8 = vld [vmem:[#allocation7] sm:$0xff]  ;;  %v614_v9 = vld [vmem:[#allocation7 + $0x8] sm:$0xff]  ;;  %v438_v10 = vld [vmem:[%s375_s9] sm:$0xff]  ;;  %vm771_vm3 = vcmask 1043456   ;;  %p430_p13 = scmp.lt.s32.totalorder %s1451_s12, 1  ;;  %s1907_s16 = sld [smem:[#allocation23_spill]] }
  0x92   : > { %v1111_v11 = vpack.c.bf16 %v614_v9, %v613_v8  ;;  %v615_v12 = vld [vmem:[#allocation7 + $0x10] sm:$0xff]  ;;  %v616_v13 = vld [vmem:[#allocation7 + $0x18] sm:$0xff]  ;;  %v524_v15 = vld [vmem:[#allocation10] sm:$0xff]  ;;  %vm754_vm4 = vcmask 64512   ;;  %s429_s25 = scalar_lea.vmem [#allocation13], %s1740_s6  ;;  %s1030_s30 = sshll.u32 %s1451_s12, 7 }
  0x93   : > { %1100 = vmatpush3.bf16.msra.mxu0 %v1099_v5  ;;  %v1114_v14 = vpack.c.bf16 %v616_v13, %v615_v12  ;;  %v525_v16 = vld [vmem:[#allocation10 + $0x8] sm:$0xff]  ;;  %v526_v18 = vld [vmem:[#allocation10 + $0x10] sm:$0xff]  ;;  %v527_v19 = vld [vmem:[#allocation10 + $0x18] sm:$0xff]  ;;  %s431_s28 = scalar_select %p430_p13, %s1451_s12, 1 }
  0x94   : > { %1101 = vmatprep.subr.bf16.mxu0 %v1467_v0  ;;  %v1105_v17 = vpack.c.bf16 %v525_v16, %v524_v15  ;;  %v1108_v20 = vpack.c.bf16 %v527_v19, %v526_v18  ;;  %v1019_v21 = vld [vmem:[%s1874_s5] ss:$0 sm:$0xff]  ;;  %s1908_s19 = sld [smem:[#allocation25_spill]]  ;;  %s851_s18 = sshll.u32 %s429_s25, 4  ;;  %s852_s18 = int_to_ptr.vmem [resolvable:$true] %s851_s18 }
  0x95   : > { %v1023_v26 = vld [vmem:[%s1873_s4] ss:$0 sm:$0xff]  ;;  %s823_s27 = scalar_lea.sflag [#allocation14], %s1737_s26  ;;  %s1337_s20 = scalar_lea.vmem %s852_s18, 128 }
  0x96   : > { %1106 = vmatpush3.bf16.msra.mxu1 %v1105_v17  ;;  %v1021_v34 = vld [vmem:[%s1906_s23] ss:$0 sm:$0xff]  ;;  %p1338_p6 = scmp.ne.s32.totalorder %s852_s18, %s1337_s20  ;;  %s1470_s23 = smov [#allocation13]  }
  0x97   : > { %1103 = vmatpush3.bf16.msra.mxu0 %v1102_v7  ;;  %1107 = vmatprep.subr.bf16.mxu1 %v1467_v0  ;;  %s432_s22 = scalar_lea.vmem %s1907_s16, %s431_s28  ;;  %s1341_s28 = sshll.u32 %s1470_s23, 4  ;;  %s1342_s28 = int_to_ptr.vmem [resolvable:$false] %s1341_s28 }
  0x98   : > { %1110 = vmatprep.subr.bf16.mxu0 %v1467_v0  ;;  %v1025_v41 = vld [vmem:[%s432_s22] ss:$0 sm:$0xff]  ;;  %p1339_p3 = pnand %p1338_p6, %p1682_p10  ;;  %s1343_s29 = scalar_lea.vmem %s1342_s28, 256 }
  0x99   : > { %p1344_p7 = scmp.lt.s32.totalorder %s852_s18, %s1342_s28  ;;  %p1345_p9 = scmp.lt.s32.totalorder %s1343_s29, %s1337_s20 }
  0x9a   : > { %1062 = vmatmul.mubr.msk.f32.vlgmr.msra.gmra.mrb[0].mxu0 %vm450_vm1, %v438_v10  ;;  %1109 = vmatpush3.bf16.msra.mxu1 %v1108_v20  ;;  %s1793_s21 = scalar_lea.hbm %s1908_s19, %s1030_s30  ;;  %p1340_p5 = pneg %p1339_p3 }
  0x9b   : > { %1112 = vmatpush3.bf16.msra.mxu0 %v1111_v11  ;;  %1083 = vmatprep.mubr.msk.f32.mxu0 %vm1468_vm0, %v1469_v1  ;;  %p1346_p0 = por %p1345_p9, %p1344_p7 }
  0x9c   : > { %1113 = vmatprep.subr.bf16.mxu0 %v1467_v0  ;;  %1086 = vmatprep.subr.bf16.mxu1 %v1469_v1 }
  0x9d   : > { %1073 = vmatmul.mubr.msk.f32.vlgmr.msra.gmra.mrb[0].mxu1 %vm450_vm1, %v438_v10  ;;  %p1347_p4 = pnand %p1346_p0, %p1340_p5 }
  0x9e   : > { %1088 = vmatprep.mubr.msk.bf16.mxu1 %vm1468_vm0, %v1469_v1 }
  0x9f   : > { %1115 = vmatpush3.bf16.msra.mxu0 %v1114_v14 }
  0xa0   : > { %1092 = vmatprep.subr.bf16.mxu0 %v1469_v1 }
  0xa2   : > { %1084 = vmatmul.mubr.msk.f32.vlgmr.msra.gmra.mrb[2].mxu0 %vm450_vm1, %v438_v10 }
  0xa3   : > { %1094 = vmatprep.mubr.msk.bf16.mxu0 %vm1468_vm0, %v1469_v1 }
 0x16d   : > { %v520_v22 = vpop.f32.mrb[0].mxu0 }
 0x16e   : > { %v521_v23 = vadd.f32 %v1019_v21, %v520_v22  ;;  %v1063_v24 = vpop.f32.mrb[1].mxu0 }
 0x170   : > { %v605_v25 = vpack.c.bf16 %v521_v23, %v521_v23  ;;  %v601_v35 = vpop.f32.mrb[0].mxu1 }
 0x171   : > { %v602_v36 = vadd.f32 %v1021_v34, %v601_v35  ;;  %v1074_v37 = vpop.f32.mrb[1].mxu1 }
 0x172   : > { %607 = vst.msk [vmem:[#allocation2] sm:$0xf] %vm606_vm2, %v605_v25 }
 0x173   : > { %v608_v38 = vpack.c.bf16 %v602_v36, %v602_v36 }
 0x175   : > { %v694_v27 = vpop.f32.mrb[2].mxu0  ;;  %609 = vst.msk [vmem:[#allocation3] sm:$0xf] %vm606_vm2, %v608_v38 }
 0x176   : > { %v695_v28 = vadd.f32 %v1023_v26, %v694_v27  ;;  %v1085_v29 = vpop.f32.mrb[3].mxu0 }
 0x178   : > { %v698_v31 = vmul.f32 0.35355338, %v695_v28 }
 0x179   : > { %v700_v30 = vld [vmem:[#allocation2] sm:$0xf] }
 0x17a   : > { %v712_v32 = vsel %vm450_vm1, %v700_v30, 0  ;;  %v699_v33 = vpack.c.bf16 %v698_v31, %v698_v31 }
 0x17b   : > { %1087 = vmatpush3.bf16.xpose.msra.mxu1 %v712_v32 }
 0x17c   : > { %v767_v39 = vld [vmem:[#allocation3] sm:$0xf] }
 0x17d   : > { %v773_v40 = vsel %vm771_vm3, %v767_v39, 0 }
 0x17e   : > { %1093 = vmatpush3.bf16.msra.mxu0 %v773_v40 }
 0x182   : > { %1089 = vmatmul.mubr.msk.bf16.vlgmr.msra.gmra.mrb[4].mxu1 %vm450_vm1, %v699_v33 }
 0x255   : > { %v748_v42 = vpop.f32.mrb[4].mxu1 }
 0x256   : > { %v749_v43 = vadd.f32 %v1025_v41, %v748_v42  ;;  %v1090_v44 = vpop.f32.mrb[5].mxu1 }
 0x257   : > { %v751_v45 = vpop.f32.mrb[6].mxu1 }
 0x258   : > { %v1091_v46 = vpop.f32.mrb[7].mxu1  ;;  %v755_v47 = vsel %vm754_vm4, %v749_v43, -inf }
 0x259   : > { %756 = vmax.xlane.f32.xlu0 %v755_v47 }
 0x2e6   : > { %v757_v48 = vpop.xlane.xlu0 %756 }
 0x2e7   : > { %v758_v49 = vsub.f32 %v749_v43, %v757_v48 }
 0x2e9   : > { %v759_v50 = vmul.f32 1.442695, %v758_v49 }
 0x2eb   : > { %1219 = vpow2.f32 %v759_v50 }
 0x2f5   : > { %v1220_v51 = vpop.eup %1219 }
 0x2f6   : > { %v761_v52 = vsel %vm754_vm4, %v1220_v51, 0.0 }
 0x2f7   : > { %762 = vadd.xlane.f32.xlu0 %v761_v52 }
 0x384   : > { %v763_v53 = vpop.xlane.xlu0 %762 }
 0x385   : > { %1221 = vrcp.f32 %v763_v53 }
 0x38f   : > { %v1222_v54 = vpop.eup %1221 }
 0x390   : > { %v765_v55 = vmul.f32 %v1222_v54, %v1220_v51 }
 0x392   : > { %v766_v56 = vpack.c.bf16 %v765_v55, %v765_v55  ;;  %816 = vst.msk [vmem:[%s429_s25] sm:$0xff] %vm754_vm4, %v765_v55 }
 0x394   : > { %1095 = vmatmul.mubr.msk.bf16.vlgmr.msra.gmra.mrb[4].mxu0 %vm754_vm4, %v766_v56 }
 0x395   : > { %1350 = shalt.err (!%p1347_p4)
}
 0x396   : > { %s1351_s8 = scalar_lea.hbm %s1793_s21, 128  ;;  %s1355_s25 = scalar_lea.hbm %s1908_s19, 256 }
 0x397   : > { %p1352_p2 = scmp.ne.s32.totalorder %s1793_s21, %s1351_s8  ;;  %p1356_p12 = scmp.lt.u32.totalorder %s1793_s21, %s1908_s19 }
 0x398   : > { %p1357_p11 = scmp.lt.u32.totalorder %s1355_s25, %s1351_s8  ;;  %p1359_p6 = scmp.lt.u32.totalorder %s1351_s8, %s1793_s21 }
 0x399   : > { %p1353_p8 = pnand %p1352_p2, %p1682_p10 }
 0x39a   : > { %p1358_p13 = por %p1357_p11, %p1356_p12 }
 0x39b   : > { %p1354_p1 = pneg %p1353_p8 }
 0x39c   : > { %p1360_p3 = por %p1359_p6, %p1358_p13 }
 0x39e   : > { %p1361_p5 = pnand %p1360_p3, %p1354_p1 }
 0x3a0   : > { %1364 = shalt.err (!%p1361_p5)
}
 0x3a1   : > { %1131 = dma.vmem_to_hbm [thread:$0]  (%p1682_p10), %s852_s18, 128, %s1793_s21, %s823_s27  }
 0x3a2   : > { %s422_s20 = scalar_lea.vmem [#allocation12], %s1740_s6  ;;  %s1909_s16 = sld [smem:[#allocation24_spill]] }
 0x3a3   : > { %s837_s23 = sshll.u32 %s422_s20, 4  ;;  %s818_s8 = scalar_lea.sflag [#allocation6], %s1737_s26  ;;  %s1821_s23 = int_to_ptr.vmem [resolvable:$true] %s837_s23 }
 0x3a4   : > { %s1365_s21 = scalar_lea.vmem %s1821_s23, 128  ;;  %s1471_s12 = smov [#allocation12]  }
 0x3a5   : > { %p1366_p7 = scmp.ne.s32.totalorder %s1821_s23, %s1365_s21  ;;  %s1369_s6 = sshll.u32 %s1471_s12, 4  ;;  %s1370_s6 = int_to_ptr.vmem [resolvable:$false] %s1369_s6 }
 0x3a6   : > { %p1372_p4 = scmp.lt.s32.totalorder %s1821_s23, %s1370_s6 }
 0x3a7   : > { %p1367_p9 = pnand %p1366_p7, %p1682_p10 }
 0x3a8   : > { %s1819_s22 = scalar_lea.hbm %s1909_s16, %s1030_s30  ;;  %s1371_s30 = scalar_lea.vmem %s1370_s6, 256 }
 0x3a9   : > { %p1368_p0 = pneg %p1367_p9  ;;  %p1373_p2 = scmp.lt.s32.totalorder %s1371_s30, %s1365_s21 }
 0x3ab   : > { %p1374_p8 = por %p1373_p2, %p1372_p4 }
 0x3ad   : > { %p1375_p1 = pnand %p1374_p8, %p1368_p0 }
 0x467   : > { %v809_v57 = vpop.f32.mrb[4].mxu0 }
 0x468   : > { %815 = vst.msk [vmem:[%s422_s20] sm:$0xff] %vm450_vm1, %v809_v57  ;;  %v1096_v58 = vpop.f32.mrb[5].mxu0 }
 0x469   : > { %v812_v59 = vpop.f32.mrb[6].mxu0 }
 0x46a   : > { %1378 = shalt.err (!%p1375_p1)
}
 0x46b   : > { %s1379_s26 = scalar_lea.hbm %s1819_s22, 128  ;;  %s1383_s25 = scalar_lea.hbm %s1909_s16, 256 }
 0x46c   : > { %p1380_p12 = scmp.ne.s32.totalorder %s1819_s22, %s1379_s26  ;;  %p1384_p6 = scmp.lt.u32.totalorder %s1819_s22, %s1909_s16 }
 0x46d   : > { %p1385_p3 = scmp.lt.u32.totalorder %s1383_s25, %s1379_s26  ;;  %p1387_p7 = scmp.lt.u32.totalorder %s1379_s26, %s1819_s22 }
 0x46e   : > { %p1381_p11 = pnand %p1380_p12, %p1682_p10 }
 0x46f   : > { %p1386_p5 = por %p1385_p3, %p1384_p6 }
 0x470   : > { %p1382_p13 = pneg %p1381_p11 }
 0x471   : > { %p1388_p9 = por %p1387_p7, %p1386_p5 }
 0x473   : > { %p1389_p0 = pnand %p1388_p9, %p1382_p13 }
 0x475   : > { %1392 = shalt.err (!%p1389_p0)
}
 0x476   : > { %1130 = dma.vmem_to_hbm [thread:$0]  (%p1682_p10), %s1821_s23, 128, %s1819_s22, %s818_s8   ;;  %v1097_v60 = vpop.f32.mrb[7].mxu0 }
 0x477 PF: > { %s1910_s20 = sld [smem:[#allocation20_spill]]  ;;  %s1911_s28 = sld [smem:[#allocation21_spill]] }
 0x478   : > { %p1913_p2 = scmp.ge.s32.totalorder %s1459_s14, 2 }
 0x47d   : > { %s863_s29 = sand.u32 1, %s1910_s20   ;;  %p1912_p4 = scmp.ne.s32.totalorder %s1911_s28, 0 }
 0x47e   : > { %s864_s21 = scalar_lea.sflag [#allocation6], %s863_s29 }
 0x47f   : > { %p1149_p8 = pnand %p1913_p2, %p1912_p4 }
 0x481   : > { %1430 = dma.done.wait (!%p1149_p8), %s864_s21, 128  }
 0x482   : > { %1432 = vsyncadd (!%p1149_p8), %s864_s21, 4294967168  ;;  %s873_s12 = scalar_lea.sflag [#allocation14], %s863_s29 }
 0x483   : > { %1434 = dma.done.wait (!%p1149_p8), %s873_s12, 128  }
 0x484   : > { %1436 = vsyncadd (!%p1149_p8), %s873_s12, 4294967168  ;;  %s31_s14 = sadd.s32 1, %s1459_s14   ;;  %s1914_s30 = smov %s1443_s10 }
 0x485   : > { %p28_p1 = scmp.ge.s32.totalorder %s31_s14, 4   ;;  %s1915_s10 = smov %s1447_s11 }
 0x486   : > { %s1916_s11 = smov %s1694_s15  ;;  %s1917_s12 = smov %s1455_s13 }
 0x487   : > { %s1918_s13 = smov %s1920_s24  ;;  %30 = sbr.rel (!%p28_p1) target bundleno = 15 (0xf), region = 134 }
 0x48e   :  { %878 = vsyncpa [#allocation5], 1 }
 0x48f   :  { %880 = vsyncpa [#allocation5 + $0x1], 1 }
 0x490   :  { %881 = vsyncpa [#allocation8], 1 }
 0x491   :  { %882 = vsyncpa [#allocation11], 1 }
 0x492   :  { %883 = vsyncpa [#allocation6], 1 }
 0x493   :  { %885 = vsyncpa [#allocation6 + $0x1], 1 }
 0x494   :  { %886 = vsyncpa [#allocation14], 1 }
 0x495   :  { %888 = vsyncpa [#allocation14 + $0x1], 1 }

</bundles_post_ra>
